<compile_context>
chip_gen: v7x
topology: tpu7x:2x2x1
jax: 0.10.0
libtpu: 0.0.40
codegen_flags: <defaults>
</compile_context>

<pallas_src>
import functools

import jax
import jax.numpy as jnp
import numpy as np
from jax import lax
from jax.experimental import pallas as pl
from jax.experimental.pallas import tpu as pltpu

NUM_GROUPS = 2
EPS = 1e-5
NEG_SLOPE = 0.2
LANE = 128


def stride_generator(N, reverse=False):
    strides = [1, 2] * 10
    if reverse:
        return list(reversed(strides[:N]))
    return strides[:N]


def _round_up(x, m):
    return -(-x // m) * m


def _vmem_capacity_bytes(default=64 * 1024 * 1024):
    try:
        info = pltpu.get_tpu_info()
        for name in ("vmem_capacity_bytes", "vmem_bytes", "vmem_size_bytes"):
            v = getattr(info, name, None)
            if v:
                return int(v)
    except Exception:
        pass
    return default


# ---------------------------------------------------------------------------
# Pallas kernel: fused 3x3 conv (single big matmul over an in-VMEM tap scratch)
#                + GroupNorm(2) + LeakyReLU.  One block of `nb` samples/step.
# ---------------------------------------------------------------------------
def _convsc_kernel(x_ref, w_ref, b_ref, gamma_ref, beta_ref, mask_ref, out_ref,
                   xs_ref, *, stride, wrow, lo_pad, n_valid, nb, c_in_p):
    # x_ref    : (nb, PP, C_in_p, Lf)   bf16  flattened (parity-decomposed) padded input
    # w_ref    : (C_out, 9*C_in_p)      bf16  tap-major fused weights
    # b/gamma/beta_ref : (C_out, 1)     f32
    # mask_ref : (1, nb*Lo_pad)         f32   1.0 on real output columns, 0.0 on pad
    # out_ref  : (nb, C_out, Lo_pad)    f32/bf16
    # xs_ref   : (9*C_in_p, nb*Lo_pad)  bf16  VMEM im2col scratch (fully rewritten each step)
    c_out = out_ref.shape[1]
    cg = c_out // NUM_GROUPS
    inv_cnt = 1.0 / float(cg * n_valid)

    # ---- build the tap scratch: 9*nb contiguous copies, 128-aligned dense stores ----
    for n in range(nb):
        for kh in range(3):
            for kw in range(3):
                pidx = (kh % stride) * stride + (kw % stride)   # parity image
                d = (kh // stride) * wrow + (kw // stride)      # flat source offset (static)
                t = kh * 3 + kw
                xs_ref[t * c_in_p:(t + 1) * c_in_p,
                       n * lo_pad:(n + 1) * lo_pad] = x_ref[n, pidx, :, pl.ds(d, lo_pad)]

    # ---- one (C_out, K) x (K, nb*Lo_pad) MXU matmul for the whole block ----
    acc = jnp.dot(w_ref[...], xs_ref[...], preferred_element_type=jnp.float32)
    # Masked columns (row-pad + lane-pad) are zeroed so they drop out of the GN sums.
    y = (acc + b_ref[...]) * mask_ref[...]

    gamma = gamma_ref[...]                                       # hoisted, read once
    beta = beta_ref[...]
    ch = lax.broadcasted_iota(jnp.int32, (c_out, 1), 0)

    # ---- per-sample GroupNorm(2) with fused affine + LeakyReLU ----
    for n in range(nb):
        yn = y[:, n * lo_pad:(n + 1) * lo_pad]                   # (C_out, Lo_pad), 128-aligned
        rs1 = jnp.sum(yn, axis=1, keepdims=True)                 # (C_out, 1) lane reduce (XLU)
        rs2 = jnp.sum(yn * yn, axis=1, keepdims=True)
        mu_full = jnp.zeros((c_out, 1), jnp.float32)
        inv_full = jnp.zeros((c_out, 1), jnp.float32)
        for g in range(NUM_GROUPS):
            s1 = jnp.sum(rs1[g * cg:(g + 1) * cg], axis=0, keepdims=True)   # (1, 1)
            s2 = jnp.sum(rs2[g * cg:(g + 1) * cg], axis=0, keepdims=True)
            mu = s1 * inv_cnt
            var = s2 * inv_cnt - mu * mu
            inv = lax.rsqrt(var + EPS)
            sel = (ch >= g * cg) & (ch < (g + 1) * cg)
            mu_full = jnp.where(sel, mu, mu_full)
            inv_full = jnp.where(sel, inv, inv_full)
        a = inv_full * gamma                      # per-channel scale  (affine fold)
        c = beta - mu_full * a                    # per-channel shift
        z = yn * a + c
        # NOTE: pad columns hold finite garbage (c); the wrapper drops them.
        out_ref[n] = jnp.where(z > 0, z, NEG_SLOPE * z).astype(out_ref.dtype)


def convsc_pallas(x, w, b, gamma, beta, stride, *, out_dtype=jnp.float32,
                  compute_dtype=jnp.bfloat16, max_samples_per_step=4):
    """One ConvSC layer. x: (N, C_in, H, W) NCHW -> (N, C_out, Ho, Wo) NCHW."""
    N, C_in, H, W = x.shape
    C_out = w.shape[0]
    assert C_out % NUM_GROUPS == 0
    assert stride in (1, 2)
    Ho = (H + 2 - 3) // stride + 1
    Wo = (W + 2 - 3) // stride + 1

    # --- glue (all XLA, ~1x data): pad, (stride 2) parity decompose, flatten ---
    x_pad = jnp.pad(x, ((0, 0), (0, 0), (1, 1), (1, 1)))
    if stride == 1:
        xb = x_pad[:, None]                                     # (N, 1, C_in, H+2, W+2)
    else:
        assert H % 2 == 0 and W % 2 == 0, "stride-2 ConvSC expects even spatial dims"
        # space-to-depth parity split: every tap becomes a contiguous window of
        # one parity image, so the kernel needs no strided access at all.
        xb = jnp.stack([x_pad[:, :, ph::2, pw::2]
                        for ph in range(2) for pw in range(2)], axis=1)
    PP, Hrow, Wrow = xb.shape[1], xb.shape[3], xb.shape[4]
    Lo = Ho * Wrow                        # flattened output frame
    Lo_pad = _round_up(Lo, LANE)          # lane-dense output width
    max_d = (2 // stride) * Wrow + (2 // stride)   # largest tap offset
    Lf = max_d + Lo_pad                   # every Lo_pad-wide tap slice stays in bounds

    xf = xb.reshape(N, PP, C_in, Hrow * Wrow)
    xf = jnp.pad(xf, ((0, 0), (0, 0), (0, 0), (0, Lf - Hrow * Wrow)))

    # pad C_in to a multiple of 16 (bf16 sublane packing); zero channels are inert
    C_in_p = _round_up(C_in, 16)
    if C_in_p != C_in:
        xf = jnp.pad(xf, ((0, 0), (0, 0), (0, C_in_p - C_in), (0, 0)))
    xf = xf.astype(compute_dtype)

    # weights: (C_out, C_in, 3, 3) -> lane-major fused (C_out, 9*C_in_p),
    # row-block order matches the scratch: tap index t = kh*3 + kw.
    K = 9 * C_in_p
    w_t = jnp.transpose(w, (0, 2, 3, 1)).reshape(C_out, 9, C_in)
    if C_in_p != C_in:
        w_t = jnp.pad(w_t, ((0, 0), (0, 0), (0, C_in_p - C_in)))
    w_fused = w_t.reshape(C_out, K).astype(compute_dtype)

    b2 = b.reshape(C_out, 1).astype(jnp.float32)
    g2 = gamma.reshape(C_out, 1).astype(jnp.float32)
    be2 = beta.reshape(C_out, 1).astype(jnp.float32)

    col = jnp.arange(Lo_pad)
    base_mask = ((col < Lo) & ((col % Wrow) < Wo)).astype(jnp.float32)

    # --- nb selection: divisor of N, <= N//2 (>= 2 grid steps), fits VMEM budget ---
    out_isize = jnp.dtype(out_dtype).itemsize

    def vmem_est(nb):
        in_blk = nb * PP * C_in_p * Lf * 2
        out_blk = nb * C_out * Lo_pad * out_isize
        params_b = C_out * K * 2 + 3 * C_out * 4 + nb * Lo_pad * 4
        scratch = K * nb * Lo_pad * 2
        return 2 * (in_blk + out_blk + params_b) + scratch      # blocks double-buffered

    vmem_cap = _vmem_capacity_bytes()
    budget = (vmem_cap * 6) // 10
    nb_cap = min(max_samples_per_step, max(1, N // 2))
    nb = 1
    for cand in range(nb_cap, 0, -1):
        if N % cand == 0 and vmem_est(cand) <= budget:
            nb = cand
            break
    Ltot = nb * Lo_pad
    mask = jnp.tile(base_mask, (nb,)).reshape(1, Ltot)
    vmem_limit = int(min(vmem_cap * 9 // 10,
                         max(32 * 1024 * 1024, 2 * vmem_est(nb))))

    kernel = functools.partial(_convsc_kernel, stride=stride, wrow=Wrow,
                               lo_pad=Lo_pad, n_valid=Ho * Wo, nb=nb, c_in_p=C_in_p)
    cost = pl.CostEstimate(
        flops=int(2 * N * C_out * K * Lo_pad + 8 * N * C_out * Lo_pad),
        transcendentals=int(N * NUM_GROUPS),
        bytes_accessed=int(xf.size * 2 + C_out * K * 2 + 4 * C_out * 4
                           + Ltot * 4 + N * C_out * Lo_pad * out_isize))

    out = pl.pallas_call(
        kernel,
        out_shape=jax.ShapeDtypeStruct((N, C_out, Lo_pad), out_dtype),
        grid_spec=pltpu.PrefetchScalarGridSpec(
            num_scalar_prefetch=0,
            grid=(N // nb,),
            in_specs=[
                pl.BlockSpec((nb, PP, C_in_p, Lf), lambda i: (i, 0, 0, 0)),
                pl.BlockSpec((C_out, K), lambda i: (0, 0)),
                pl.BlockSpec((C_out, 1), lambda i: (0, 0)),
                pl.BlockSpec((C_out, 1), lambda i: (0, 0)),
                pl.BlockSpec((C_out, 1), lambda i: (0, 0)),
                pl.BlockSpec((1, Ltot), lambda i: (0, 0)),
            ],
            out_specs=pl.BlockSpec((nb, C_out, Lo_pad), lambda i: (i, 0, 0)),
            scratch_shapes=[pltpu.VMEM((K, Ltot), compute_dtype)],
        ),
        compiler_params=pltpu.CompilerParams(
            dimension_semantics=("parallel",),
            vmem_limit_bytes=vmem_limit),
        cost_estimate=cost,
    )(xf, w_fused, b2, g2, be2, mask)

    # (N, C_out, Lo_pad) -> drop lane pad -> (N, C_out, Ho, Wrow) -> drop row pad.
    return out[:, :, :Lo].reshape(N, C_out, Ho, Wrow)[:, :, :, :Wo]


# ---------------------------------------------------------------------------
# LP forward
# ---------------------------------------------------------------------------
def lp_forward(x_nchw, params, strides, compute_dtype=jnp.bfloat16):
    n_layers = len(strides)
    h = x_nchw
    feats = []
    for i, ((w, b, g, be), s) in enumerate(zip(params, strides)):
        # Purely-internal activations go to HBM in bf16 (the next layer casts to
        # bf16 for the MXU anyway); enc1 / latent are returned, keep them f32.
        keep_f32 = (i == 0) or (i == n_layers - 1)
        out_dtype = jnp.float32 if keep_f32 else compute_dtype
        h = convsc_pallas(h, w, b, g, be, s,
                          out_dtype=out_dtype, compute_dtype=compute_dtype)
        feats.append(h)
    return feats[-1], feats[0]          # (latent, enc1), both NCHW


# ---------------------------------------------------------------------------
# Pure-JAX reference (for correctness check).  If compute_dtype is given, the
# conv inputs are rounded through it (mirrors the kernel's bf16 MXU inputs).
# ---------------------------------------------------------------------------
def convsc_ref(x, w, b, gamma, beta, stride, compute_dtype=None):
    if compute_dtype is not None:
        x = x.astype(compute_dtype).astype(jnp.float32)
        w = w.astype(compute_dtype).astype(jnp.float32)
    else:
        x = x.astype(jnp.float32)
    y = lax.conv_general_dilated(
        x, w, (stride, stride), ((1, 1), (1, 1)),
        dimension_numbers=('NCHW', 'OIHW', 'NCHW'))
    y = y + b.reshape(1, -1, 1, 1)
    N, C, H, W = y.shape
    yg = y.reshape(N, NUM_GROUPS, C // NUM_GROUPS, H, W)
    mu = jnp.mean(yg, axis=(2, 3, 4), keepdims=True)
    var = jnp.mean((yg - mu) ** 2, axis=(2, 3, 4), keepdims=True)
    yn = ((yg - mu) * lax.rsqrt(var + EPS)).reshape(N, C, H, W)
    z = yn * gamma.reshape(1, -1, 1, 1) + beta.reshape(1, -1, 1, 1)
    return jnp.where(z > 0, z, NEG_SLOPE * z)


def lp_forward_ref(x_nchw, params, strides, compute_dtype=None):
    h = x_nchw
    feats = []
    for (w, b, g, be), s in zip(params, strides):
        h = convsc_ref(h, w, b, g, be, s, compute_dtype)
        feats.append(h)
    return feats[-1], feats[0]


def init_params(key, C_in, C_hid, N_S):
    params = []
    for i in range(N_S):
        cin = C_in if i == 0 else C_hid
        key, kw, kb, kg, kbe = jax.random.split(key, 5)
        fan_in = cin * 9
        w = jax.random.normal(kw, (C_hid, cin, 3, 3), jnp.float32) / np.sqrt(fan_in)
        b = 0.1 * jax.random.normal(kb, (C_hid,), jnp.float32)
        gamma = 1.0 + 0.1 * jax.random.normal(kg, (C_hid,), jnp.float32)
        beta = 0.1 * jax.random.normal(kbe, (C_hid,), jnp.float32)
        params.append((w, b, gamma, beta))
    return params


if __name__ == "__main__":
    # Small shapes consistent with the module: x is NCHW.
    N, C_in, H, W = 2, 4, 16, 16
    C_hid, N_S = 8, 4
    strides = stride_generator(N_S)                 # [1, 2, 1, 2]

    key = jax.random.PRNGKey(0)
    key, kx = jax.random.split(key)
    x = jax.random.normal(kx, (N, C_in, H, W), jnp.float32)
    params = init_params(key, C_in, C_hid, N_S)

    latent, enc1 = lp_forward(x, params, strides)
    latent = jax.block_until_ready(latent)
    enc1 = jax.block_until_ready(enc1)

    assert latent.shape == (N, C_hid, 4, 4), latent.shape
    assert enc1.shape == (N, C_hid, 16, 16), enc1.shape
    assert latent.dtype == jnp.float32 and enc1.dtype == jnp.float32

    # Tight check: reference with the same bf16-rounded conv inputs.
    lat_q, enc1_q = lp_forward_ref(x, params, strides, compute_dtype=jnp.bfloat16)
    np.testing.assert_allclose(np.asarray(enc1), np.asarray(enc1_q),
                               rtol=5e-3, atol=5e-3)
    np.testing.assert_allclose(np.asarray(latent), np.asarray(lat_q),
                               rtol=5e-3, atol=5e-3)

    # Loose check: pure f32 reference (bounds the bf16 MXU-input quantization).
    lat_f, enc1_f = lp_forward_ref(x, params, strides, compute_dtype=None)
    np.testing.assert_allclose(np.asarray(enc1), np.asarray(enc1_f),
                               rtol=5e-2, atol=5e-2)
    np.testing.assert_allclose(np.asarray(latent), np.asarray(lat_f),
                               rtol=5e-2, atol=5e-2)

    print("KERNEL_OK")
</pallas_src>

<mosaic_0001>
module attributes {stable_mosaic.version = 11 : i64} {
  func.func @_convsc_kernel(%arg0: i32, %arg1: memref<1x1x16x422xbf16, #tpu.memory_space<vmem>>, %arg2: memref<8x144xbf16, #tpu.memory_space<vmem>>, %arg3: memref<8x1xf32, #tpu.memory_space<vmem>>, %arg4: memref<8x1xf32, #tpu.memory_space<vmem>>, %arg5: memref<8x1xf32, #tpu.memory_space<vmem>>, %arg6: memref<1x384xf32, #tpu.memory_space<vmem>>, %arg7: memref<1x8x384xf32, #tpu.memory_space<vmem>>, %arg8: memref<144x384xbf16, #tpu.memory_space<vmem>>) attributes {dimension_semantics = [#tpu.dimension_semantics<parallel>], iteration_bounds = array<i64: 2>, scalar_prefetch = 0 : i64, scratch_operands = 1 : i64, tpu.core_type = #tpu.core_type<tc>, window_params = [{transform_indices = @transform_0, window_bounds = array<i64: 1, 1, 16, 422>}, {pipeline_mode = #tpu.pipeline_mode<synchronous>, transform_indices = @transform_1, window_bounds = array<i64: 8, 144>}, {pipeline_mode = #tpu.pipeline_mode<synchronous>, transform_indices = @transform_2, window_bounds = array<i64: 8, 1>}, {pipeline_mode = #tpu.pipeline_mode<synchronous>, transform_indices = @transform_3, window_bounds = array<i64: 8, 1>}, {pipeline_mode = #tpu.pipeline_mode<synchronous>, transform_indices = @transform_4, window_bounds = array<i64: 8, 1>}, {pipeline_mode = #tpu.pipeline_mode<synchronous>, transform_indices = @transform_5, window_bounds = array<i64: 1, 384>}, {transform_indices = @transform_6, window_bounds = array<i64: 1, 8, 384>}]} {
    %c0 = arith.constant 0 : index
    %c0_0 = arith.constant 0 : index
    %c0_1 = arith.constant 0 : index
    %c0_2 = arith.constant 0 : index
    %0 = vector.load %arg1[%c0, %c0_0, %c0_1, %c0_2] : memref<1x1x16x422xbf16, #tpu.memory_space<vmem>>, vector<1x1x16x384xbf16>
    %1 = vector.shape_cast %0 : vector<1x1x16x384xbf16> to vector<16x384xbf16>
    %c0_3 = arith.constant 0 : index
    %c0_4 = arith.constant 0 : index
    %2 = vector.load %arg8[%c0_3, %c0_4] : memref<144x384xbf16, #tpu.memory_space<vmem>>, vector<16x384xbf16>
    tpu.vector_store %arg8[%c0_3, %c0_4], %1 {strides = array<i32>} : memref<144x384xbf16, #tpu.memory_space<vmem>>, vector<16x384xbf16>,
    %c0_5 = arith.constant 0 : index
    %c0_6 = arith.constant 0 : index
    %c0_7 = arith.constant 0 : index
    %c1 = arith.constant 1 : index
    %3 = vector.load %arg1[%c0_5, %c0_6, %c0_7, %c1] : memref<1x1x16x422xbf16, #tpu.memory_space<vmem>>, vector<1x1x16x384xbf16>
    %4 = vector.shape_cast %3 : vector<1x1x16x384xbf16> to vector<16x384xbf16>
    %c16 = arith.constant 16 : index
    %c0_8 = arith.constant 0 : index
    %5 = vector.load %arg8[%c16, %c0_8] : memref<144x384xbf16, #tpu.memory_space<vmem>>, vector<16x384xbf16>
    tpu.vector_store %arg8[%c16, %c0_8], %4 {strides = array<i32>} : memref<144x384xbf16, #tpu.memory_space<vmem>>, vector<16x384xbf16>,
    %c0_9 = arith.constant 0 : index
    %c0_10 = arith.constant 0 : index
    %c0_11 = arith.constant 0 : index
    %c2 = arith.constant 2 : index
    %6 = vector.load %arg1[%c0_9, %c0_10, %c0_11, %c2] : memref<1x1x16x422xbf16, #tpu.memory_space<vmem>>, vector<1x1x16x384xbf16>
    %7 = vector.shape_cast %6 : vector<1x1x16x384xbf16> to vector<16x384xbf16>
    %c32 = arith.constant 32 : index
    %c0_12 = arith.constant 0 : index
    %8 = vector.load %arg8[%c32, %c0_12] : memref<144x384xbf16, #tpu.memory_space<vmem>>, vector<16x384xbf16>
    tpu.vector_store %arg8[%c32, %c0_12], %7 {strides = array<i32>} : memref<144x384xbf16, #tpu.memory_space<vmem>>, vector<16x384xbf16>,
    %c0_13 = arith.constant 0 : index
    %c0_14 = arith.constant 0 : index
    %c0_15 = arith.constant 0 : index
    %c18 = arith.constant 18 : index
    %9 = vector.load %arg1[%c0_13, %c0_14, %c0_15, %c18] : memref<1x1x16x422xbf16, #tpu.memory_space<vmem>>, vector<1x1x16x384xbf16>
    %10 = vector.shape_cast %9 : vector<1x1x16x384xbf16> to vector<16x384xbf16>
    %c48 = arith.constant 48 : index
    %c0_16 = arith.constant 0 : index
    %11 = vector.load %arg8[%c48, %c0_16] : memref<144x384xbf16, #tpu.memory_space<vmem>>, vector<16x384xbf16>
    tpu.vector_store %arg8[%c48, %c0_16], %10 {strides = array<i32>} : memref<144x384xbf16, #tpu.memory_space<vmem>>, vector<16x384xbf16>,
    %c0_17 = arith.constant 0 : index
    %c0_18 = arith.constant 0 : index
    %c0_19 = arith.constant 0 : index
    %c19 = arith.constant 19 : index
    %12 = vector.load %arg1[%c0_17, %c0_18, %c0_19, %c19] : memref<1x1x16x422xbf16, #tpu.memory_space<vmem>>, vector<1x1x16x384xbf16>
    %13 = vector.shape_cast %12 : vector<1x1x16x384xbf16> to vector<16x384xbf16>
    %c64 = arith.constant 64 : index
    %c0_20 = arith.constant 0 : index
    %14 = vector.load %arg8[%c64, %c0_20] : memref<144x384xbf16, #tpu.memory_space<vmem>>, vector<16x384xbf16>
    tpu.vector_store %arg8[%c64, %c0_20], %13 {strides = array<i32>} : memref<144x384xbf16, #tpu.memory_space<vmem>>, vector<16x384xbf16>,
    %c0_21 = arith.constant 0 : index
    %c0_22 = arith.constant 0 : index
    %c0_23 = arith.constant 0 : index
    %c20 = arith.constant 20 : index
    %15 = vector.load %arg1[%c0_21, %c0_22, %c0_23, %c20] : memref<1x1x16x422xbf16, #tpu.memory_space<vmem>>, vector<1x1x16x384xbf16>
    %16 = vector.shape_cast %15 : vector<1x1x16x384xbf16> to vector<16x384xbf16>
    %c80 = arith.constant 80 : index
    %c0_24 = arith.constant 0 : index
    %17 = vector.load %arg8[%c80, %c0_24] : memref<144x384xbf16, #tpu.memory_space<vmem>>, vector<16x384xbf16>
    tpu.vector_store %arg8[%c80, %c0_24], %16 {strides = array<i32>} : memref<144x384xbf16, #tpu.memory_space<vmem>>, vector<16x384xbf16>,
    %c0_25 = arith.constant 0 : index
    %c0_26 = arith.constant 0 : index
    %c0_27 = arith.constant 0 : index
    %c36 = arith.constant 36 : index
    %18 = vector.load %arg1[%c0_25, %c0_26, %c0_27, %c36] : memref<1x1x16x422xbf16, #tpu.memory_space<vmem>>, vector<1x1x16x384xbf16>
    %19 = vector.shape_cast %18 : vector<1x1x16x384xbf16> to vector<16x384xbf16>
    %c96 = arith.constant 96 : index
    %c0_28 = arith.constant 0 : index
    %20 = vector.load %arg8[%c96, %c0_28] : memref<144x384xbf16, #tpu.memory_space<vmem>>, vector<16x384xbf16>
    tpu.vector_store %arg8[%c96, %c0_28], %19 {strides = array<i32>} : memref<144x384xbf16, #tpu.memory_space<vmem>>, vector<16x384xbf16>,
    %c0_29 = arith.constant 0 : index
    %c0_30 = arith.constant 0 : index
    %c0_31 = arith.constant 0 : index
    %c37 = arith.constant 37 : index
    %21 = vector.load %arg1[%c0_29, %c0_30, %c0_31, %c37] : memref<1x1x16x422xbf16, #tpu.memory_space<vmem>>, vector<1x1x16x384xbf16>
    %22 = vector.shape_cast %21 : vector<1x1x16x384xbf16> to vector<16x384xbf16>
    %c112 = arith.constant 112 : index
    %c0_32 = arith.constant 0 : index
    %23 = vector.load %arg8[%c112, %c0_32] : memref<144x384xbf16, #tpu.memory_space<vmem>>, vector<16x384xbf16>
    tpu.vector_store %arg8[%c112, %c0_32], %22 {strides = array<i32>} : memref<144x384xbf16, #tpu.memory_space<vmem>>, vector<16x384xbf16>,
    %c0_33 = arith.constant 0 : index
    %c0_34 = arith.constant 0 : index
    %c0_35 = arith.constant 0 : index
    %c38 = arith.constant 38 : index
    %24 = vector.load %arg1[%c0_33, %c0_34, %c0_35, %c38] : memref<1x1x16x422xbf16, #tpu.memory_space<vmem>>, vector<1x1x16x384xbf16>
    %25 = vector.shape_cast %24 : vector<1x1x16x384xbf16> to vector<16x384xbf16>
    %c128 = arith.constant 128 : index
    %c0_36 = arith.constant 0 : index
    %26 = vector.load %arg8[%c128, %c0_36] : memref<144x384xbf16, #tpu.memory_space<vmem>>, vector<16x384xbf16>
    tpu.vector_store %arg8[%c128, %c0_36], %25 {strides = array<i32>} : memref<144x384xbf16, #tpu.memory_space<vmem>>, vector<16x384xbf16>,
    %c0_37 = arith.constant 0 : index
    %c0_38 = arith.constant 0 : index
    %27 = vector.load %arg2[%c0_37, %c0_38] : memref<8x144xbf16, #tpu.memory_space<vmem>>, vector<8x144xbf16>
    %c0_39 = arith.constant 0 : index
    %c0_40 = arith.constant 0 : index
    %28 = vector.load %arg8[%c0_39, %c0_40] : memref<144x384xbf16, #tpu.memory_space<vmem>>, vector<144x384xbf16>
    %cst = arith.constant dense<0.000000e+00> : vector<8x384xf32>
    %29 = tpu.matmul %27, %28, %cst {dimension_numbers = #tpu.dot_dimension_numbers<[1], [0], [0], [1], [0, 0, 1, 1], [], []>} : vector<8x144xbf16>, vector<144x384xbf16>, vector<8x384xf32> -> vector<8x384xf32>
    %c0_41 = arith.constant 0 : index
    %c0_42 = arith.constant 0 : index
    %30 = vector.load %arg3[%c0_41, %c0_42] : memref<8x1xf32, #tpu.memory_space<vmem>>, vector<8x1xf32>
    %31 = vector.broadcast %30 : vector<8x1xf32> to vector<8x384xf32>
    %32 = arith.addf %29, %31 : vector<8x384xf32>
    %c0_43 = arith.constant 0 : index
    %c0_44 = arith.constant 0 : index
    %33 = vector.load %arg6[%c0_43, %c0_44] : memref<1x384xf32, #tpu.memory_space<vmem>>, vector<1x384xf32>
    %34 = vector.broadcast %33 : vector<1x384xf32> to vector<8x384xf32>
    %35 = arith.mulf %32, %34 : vector<8x384xf32>
    %c0_45 = arith.constant 0 : index
    %c0_46 = arith.constant 0 : index
    %36 = vector.load %arg4[%c0_45, %c0_46] : memref<8x1xf32, #tpu.memory_space<vmem>>, vector<8x1xf32>
    %c0_47 = arith.constant 0 : index
    %c0_48 = arith.constant 0 : index
    %37 = vector.load %arg5[%c0_47, %c0_48] : memref<8x1xf32, #tpu.memory_space<vmem>>, vector<8x1xf32>
    %38 = tpu.iota {dimensions = array<i32: 0>} : vector<8x1xi32>
    %cst_49 = arith.constant dense<0.000000e+00> : vector<8xf32>
    %39 = vector.multi_reduction <add>, %35, %cst_49 [1] : vector<8x384xf32> to vector<8xf32>
    %40 = vector.shape_cast %39 : vector<8xf32> to vector<8x1xf32>
    %41 = arith.mulf %35, %35 : vector<8x384xf32>
    %cst_50 = arith.constant dense<0.000000e+00> : vector<8xf32>
    %42 = vector.multi_reduction <add>, %41, %cst_50 [1] : vector<8x384xf32> to vector<8xf32>
    %43 = vector.shape_cast %42 : vector<8xf32> to vector<8x1xf32>
    %cst_51 = arith.constant 0.000000e+00 : f32
    %44 = vector.broadcast %cst_51 : f32 to vector<8x1xf32>
    %cst_52 = arith.constant 0.000000e+00 : f32
    %45 = vector.broadcast %cst_52 : f32 to vector<8x1xf32>
    %46 = vector.extract_strided_slice %40 {offsets = [0, 0], sizes = [4, 1], strides = [1, 1]} : vector<8x1xf32> to vector<4x1xf32>
    %cst_53 = arith.constant dense<0.000000e+00> : vector<1xf32>
    %47 = vector.multi_reduction <add>, %46, %cst_53 [0] : vector<4x1xf32> to vector<1xf32>
    %48 = vector.shape_cast %47 : vector<1xf32> to vector<1x1xf32>
    %49 = vector.extract_strided_slice %43 {offsets = [0, 0], sizes = [4, 1], strides = [1, 1]} : vector<8x1xf32> to vector<4x1xf32>
    %cst_54 = arith.constant dense<0.000000e+00> : vector<1xf32>
    %50 = vector.multi_reduction <add>, %49, %cst_54 [0] : vector<4x1xf32> to vector<1xf32>
    %51 = vector.shape_cast %50 : vector<1xf32> to vector<1x1xf32>
    %cst_55 = arith.constant 9.765625E-4 : f32
    %52 = vector.broadcast %cst_55 : f32 to vector<1x1xf32>
    %53 = arith.mulf %48, %52 : vector<1x1xf32>
    %cst_56 = arith.constant 9.765625E-4 : f32
    %54 = vector.broadcast %cst_56 : f32 to vector<1x1xf32>
    %55 = arith.mulf %51, %54 : vector<1x1xf32>
    %56 = arith.mulf %53, %53 : vector<1x1xf32>
    %57 = arith.subf %55, %56 : vector<1x1xf32>
    %cst_57 = arith.constant 9.99999974E-6 : f32
    %58 = vector.broadcast %cst_57 : f32 to vector<1x1xf32>
    %59 = arith.addf %57, %58 : vector<1x1xf32>
    %60 = math.rsqrt %59 : vector<1x1xf32>
    %c0_i32 = arith.constant 0 : i32
    %61 = vector.broadcast %c0_i32 : i32 to vector<8x1xi32>
    %62 = arith.cmpi sge, %38, %61 : vector<8x1xi32>
    %c4_i32 = arith.constant 4 : i32
    %63 = vector.broadcast %c4_i32 : i32 to vector<8x1xi32>
    %64 = arith.cmpi slt, %38, %63 : vector<8x1xi32>
    %65 = arith.andi %62, %64 : vector<8x1xi1>
    %66 = vector.shape_cast %53 : vector<1x1xf32> to vector<1x1xf32>
    %67 = vector.broadcast %66 : vector<1x1xf32> to vector<8x1xf32>
    %68 = arith.select %65, %67, %44 : vector<8x1xi1>, vector<8x1xf32>
    %69 = vector.shape_cast %60 : vector<1x1xf32> to vector<1x1xf32>
    %70 = vector.broadcast %69 : vector<1x1xf32> to vector<8x1xf32>
    %71 = arith.select %65, %70, %45 : vector<8x1xi1>, vector<8x1xf32>
    %72 = vector.extract_strided_slice %40 {offsets = [4, 0], sizes = [4, 1], strides = [1, 1]} : vector<8x1xf32> to vector<4x1xf32>
    %cst_58 = arith.constant dense<0.000000e+00> : vector<1xf32>
    %73 = vector.multi_reduction <add>, %72, %cst_58 [0] : vector<4x1xf32> to vector<1xf32>
    %74 = vector.shape_cast %73 : vector<1xf32> to vector<1x1xf32>
    %75 = vector.extract_strided_slice %43 {offsets = [4, 0], sizes = [4, 1], strides = [1, 1]} : vector<8x1xf32> to vector<4x1xf32>
    %cst_59 = arith.constant dense<0.000000e+00> : vector<1xf32>
    %76 = vector.multi_reduction <add>, %75, %cst_59 [0] : vector<4x1xf32> to vector<1xf32>
    %77 = vector.shape_cast %76 : vector<1xf32> to vector<1x1xf32>
    %cst_60 = arith.constant 9.765625E-4 : f32
    %78 = vector.broadcast %cst_60 : f32 to vector<1x1xf32>
    %79 = arith.mulf %74, %78 : vector<1x1xf32>
    %cst_61 = arith.constant 9.765625E-4 : f32
    %80 = vector.broadcast %cst_61 : f32 to vector<1x1xf32>
    %81 = arith.mulf %77, %80 : vector<1x1xf32>
    %82 = arith.mulf %79, %79 : vector<1x1xf32>
    %83 = arith.subf %81, %82 : vector<1x1xf32>
    %cst_62 = arith.constant 9.99999974E-6 : f32
    %84 = vector.broadcast %cst_62 : f32 to vector<1x1xf32>
    %85 = arith.addf %83, %84 : vector<1x1xf32>
    %86 = math.rsqrt %85 : vector<1x1xf32>
    %c4_i32_63 = arith.constant 4 : i32
    %87 = vector.broadcast %c4_i32_63 : i32 to vector<8x1xi32>
    %88 = arith.cmpi sge, %38, %87 : vector<8x1xi32>
    %c8_i32 = arith.constant 8 : i32
    %89 = vector.broadcast %c8_i32 : i32 to vector<8x1xi32>
    %90 = arith.cmpi slt, %38, %89 : vector<8x1xi32>
    %91 = arith.andi %88, %90 : vector<8x1xi1>
    %92 = vector.shape_cast %79 : vector<1x1xf32> to vector<1x1xf32>
    %93 = vector.broadcast %92 : vector<1x1xf32> to vector<8x1xf32>
    %94 = arith.select %91, %93, %68 : vector<8x1xi1>, vector<8x1xf32>
    %95 = vector.shape_cast %86 : vector<1x1xf32> to vector<1x1xf32>
    %96 = vector.broadcast %95 : vector<1x1xf32> to vector<8x1xf32>
    %97 = arith.select %91, %96, %71 : vector<8x1xi1>, vector<8x1xf32>
    %98 = arith.mulf %97, %36 : vector<8x1xf32>
    %99 = arith.mulf %94, %98 : vector<8x1xf32>
    %100 = arith.subf %37, %99 : vector<8x1xf32>
    %101 = vector.broadcast %98 : vector<8x1xf32> to vector<8x384xf32>
    %102 = arith.mulf %35, %101 : vector<8x384xf32>
    %103 = vector.broadcast %100 : vector<8x1xf32> to vector<8x384xf32>
    %104 = arith.addf %102, %103 : vector<8x384xf32>
    %cst_64 = arith.constant 0.000000e+00 : f32
    %105 = vector.broadcast %cst_64 : f32 to vector<8x384xf32>
    %106 = arith.cmpf ogt, %104, %105 : vector<8x384xf32>
    %cst_65 = arith.constant 2.000000e-01 : f32
    %107 = vector.broadcast %cst_65 : f32 to vector<8x384xf32>
    %108 = arith.mulf %107, %104 : vector<8x384xf32>
    %109 = arith.select %106, %104, %108 : vector<8x384xi1>, vector<8x384xf32>
    %c0_66 = arith.constant 0 : index
    %c0_67 = arith.constant 0 : index
    %c0_68 = arith.constant 0 : index
    %110 = vector.load %arg7[%c0_66, %c0_67, %c0_68] : memref<1x8x384xf32, #tpu.memory_space<vmem>>, vector<1x8x384xf32>
    %111 = vector.shape_cast %110 : vector<1x8x384xf32> to vector<8x384xf32>
    %112 = vector.shape_cast %109 : vector<8x384xf32> to vector<1x8x384xf32>
    tpu.vector_store %arg7[%c0_66, %c0_67, %c0_68], %112 {strides = array<i32>} : memref<1x8x384xf32, #tpu.memory_space<vmem>>, vector<1x8x384xf32>,
    return
  }
  func.func @transform_0(%arg0: i32) -> (i32, i32, i32, i32) {
    %c0_i32 = arith.constant 0 : i32
    %c0_i32_0 = arith.constant 0 : i32
    %c0_i32_1 = arith.constant 0 : i32
    %c0_i32_2 = arith.constant 0 : i32
    return %arg0, %c0_i32, %c0_i32_0, %c0_i32_1 : i32, i32, i32, i32
  }
  func.func @transform_1(%arg0: i32) -> (i32, i32) {
    %c0_i32 = arith.constant 0 : i32
    %c0_i32_0 = arith.constant 0 : i32
    %c0_i32_1 = arith.constant 0 : i32
    return %c0_i32, %c0_i32_0 : i32, i32
  }
  func.func @transform_2(%arg0: i32) -> (i32, i32) {
    %c0_i32 = arith.constant 0 : i32
    %c0_i32_0 = arith.constant 0 : i32
    %c0_i32_1 = arith.constant 0 : i32
    return %c0_i32, %c0_i32_0 : i32, i32
  }
  func.func @transform_3(%arg0: i32) -> (i32, i32) {
    %c0_i32 = arith.constant 0 : i32
    %c0_i32_0 = arith.constant 0 : i32
    %c0_i32_1 = arith.constant 0 : i32
    return %c0_i32, %c0_i32_0 : i32, i32
  }
  func.func @transform_4(%arg0: i32) -> (i32, i32) {
    %c0_i32 = arith.constant 0 : i32
    %c0_i32_0 = arith.constant 0 : i32
    %c0_i32_1 = arith.constant 0 : i32
    return %c0_i32, %c0_i32_0 : i32, i32
  }
  func.func @transform_5(%arg0: i32) -> (i32, i32) {
    %c0_i32 = arith.constant 0 : i32
    %c0_i32_0 = arith.constant 0 : i32
    %c0_i32_1 = arith.constant 0 : i32
    return %c0_i32, %c0_i32_0 : i32, i32
  }
  func.func @transform_6(%arg0: i32) -> (i32, i32, i32) {
    %c0_i32 = arith.constant 0 : i32
    %c0_i32_0 = arith.constant 0 : i32
    %c0_i32_1 = arith.constant 0 : i32
    return %arg0, %c0_i32, %c0_i32_0 : i32, i32, i32
  }
}

</mosaic_0001>

<bundles_post_ra>
// kernel: tpu_custom_call.1
= control target key start
LH: loop header
LB: loop body
LE: loop exit
PB: predicated region body
PF: predicated region fallthrough
CT: control target
= control target key end

     0   :  { %11 = vsyncpa [#allocation4], 0  ;;  %s1420_s0 = inlined_call_operand.hbm [shape: bf16[2,1,16,422], index: 0, kind: input, shape index: {}]   ;;  %s1421_s1 = inlined_call_operand.vmem [shape: bf16[8,144], index: 1, kind: input, shape index: {}]   ;;  %s1422_s2 = inlined_call_operand.vmem [shape: f32[8,1], index: 2, kind: input, shape index: {}]   ;;  %s1423_s3 = inlined_call_operand.vmem [shape: f32[8,1], index: 3, kind: input, shape index: {}]   ;;  %s1424_s4 = inlined_call_operand.vmem [shape: f32[8,1], index: 4, kind: input, shape index: {}]   ;;  %s1425_s5 = inlined_call_operand.vmem [shape: f32[1,384], index: 5, kind: input, shape index: {}]   ;;  %s1426_s6 = inlined_call_operand.hbm [shape: f32[2,8,384], index: 6, kind: output, shape index: {}]  }
   0x1   :  { %13 = vsyncpa [#allocation4 + $0x1], 0 }
   0x2   :  { %14 = vsyncpa [#allocation5], 0 }
   0x3   :  { %16 = vsyncpa [#allocation5 + $0x1], 0  ;;  %s1202_s21 = smov 0   ;;  %s1204_s22 = smov 0  }
   0x4   :  { %s1206_s23 = smov 0   ;;  %s1208_s24 = smov 0  }
   0x5 LB: > { %s1223_s25 = sadd.s32 4294967295, %s1152_s24   ;;  %s931_s26 = sadd.s32 4294967294, %s1152_s24   ;;  %s1152_s24 = sphi %s1208_s24, %s1439_s24   ;;  %s1148_s23 = sphi %s1206_s23, %s1438_s23   ;;  %s1144_s22 = sphi %s1204_s22, %s1437_s22   ;;  %s1140_s21 = sphi %s1202_s21, %s1436_s21  }
   0x6   : > { %s1227_s27 = sadd.s32 1, %s1152_s24   ;;  %s29_s28 = sadd.s32 1, %s1148_s23 }
   0x7   : > { %s26_s29 = ssub.s32 %s1152_s24, %s1227_s27  ;;  %p36_p0 = scmp.ne.s32.totalorder %s1148_s23, %s1144_s22 }
   0x8   : > { %p27_p1 = scmp.eq.s32.totalorder %s26_s29, 0  ;;  %p37_p2 = scmp.eq.s32.totalorder %s1152_s24, 0 }
   0x9   : > { %p42_p3 = scmp.ne.s32.totalorder %s1144_s22, %s1140_s21  ;;  %p43_p4 = scmp.eq.s32.totalorder %s1223_s25, 0 }
   0xa   : > { %s1239_s30 = scalar_select %p27_p1, %s1148_s23, %s29_s28  }
   0xb   : > { %p1241_p5 = por %p37_p2, %p36_p0  ;;  %p1245_p6 = por %p43_p4, %p42_p3 }
   0xc   : > { %p171_p7 = scmp.eq.s32.totalorder %s1223_s25, 1  ;;  %p177_p8 = scmp.eq.s32.totalorder %s931_s26, 1 }
   0xd   : > { %p996_p10 = scmp.lt.s32.totalorder %s1152_s24, 2  ;;  %s212_s11 = sand.u32 1, %s1148_s23  }
   0xe   : > { %p1252_p11 = por %p171_p7, %p36_p0  ;;  %p1256_p12 = por %p177_p8, %p42_p3 }
   0xf   : > { %s981_s12 = sshll.u32 %s1152_s24, 9  ;;  %s934_s13 = sshll.u32 %s212_s11, 5 }
  0x10   : > { %s1430_s9 = scalar_select %p1252_p11, 1, 0 }
  0x11   : > { %s1431_s10 = scalar_select %p1256_p12, 1, 0 }
  0x12   : > { %s1265_s16 = scalar_lea.hbm %s1420_s0, %s981_s12  ;;  %s216_s17 = scalar_lea.vmem [#allocation3], %s934_s13 }
  0x13   : > { %s223_s18 = sshll.u32 %s216_s17, 4  ;;  %p1269_p13 = pnand %p996_p10, %p1241_p5  ;;  %s1273_s18 = int_to_ptr.vmem [resolvable:$true] %s223_s18 }
  0x14   : > { %s1275_s20 = scalar_lea.sflag [#allocation4], %s212_s11  ;;  %s1056_s26 = scalar_lea.hbm %s1265_s16, 512 }
  0x15   : > { %p1057_p0 = scmp.ne.s32.totalorder %s1265_s16, %s1056_s26  ;;  %p1058_p1 = pneg %p1269_p13 }
  0x16   : > { %s1061_s7 = scalar_lea.hbm %s1420_s0, 1024  ;;  %p1062_p4 = scmp.lt.u32.totalorder %s1265_s16, %s1420_s0 }
  0x17   : > { %p1059_p2 = pnand %p1058_p1, %p1057_p0  ;;  %p1063_p5 = scmp.lt.u32.totalorder %s1061_s7, %s1056_s26 }
  0x18   : > { %p1065_p8 = scmp.lt.u32.totalorder %s1056_s26, %s1265_s16 }
  0x19   : > { %p1060_p3 = pneg %p1059_p2  ;;  %p1064_p7 = por %p1063_p5, %p1062_p4 }
  0x1b   : > { %p1066_p10 = por %p1065_p8, %p1064_p7 }
  0x1d   : > { %p1067_p9 = pnand %p1066_p10, %p1060_p3 }
  0x1f   : > { %1070 = shalt.err (!%p1067_p9)
}
  0x20   : > { %s1071_s11 = scalar_lea.vmem %s1273_s18, 512  ;;  %s1154_s14 = smov [#allocation3]  }
  0x21   : > { %p1072_p0 = scmp.ne.s32.totalorder %s1273_s18, %s1071_s11  ;;  %s1076_s15 = sshll.u32 %s1154_s14, 4  ;;  %s1077_s15 = int_to_ptr.vmem [resolvable:$false] %s1076_s15 }
  0x22   : > { %s1078_s17 = scalar_lea.vmem %s1077_s15, 1024  ;;  %p1079_p11 = scmp.lt.s32.totalorder %s1273_s18, %s1077_s15 }
  0x23   : > { %p1074_p2 = pnand %p1072_p0, %p1058_p1  ;;  %p1080_p4 = scmp.lt.s32.totalorder %s1078_s17, %s1071_s11 }
  0x25   : > { %p1075_p12 = pneg %p1074_p2  ;;  %p1081_p5 = por %p1080_p4, %p1079_p11 }
  0x27   : > { %p1082_p7 = pnand %p1081_p5, %p1075_p12 }
  0x29   : > { %1085 = shalt.err (!%p1082_p7)
}
  0x2a   : > { %s1155_s26 = smov 256   ;;  %s1156_s28 = smov 16  }
  0x2b   : > { %991 = dma.hbm_to_vmem [thread:$0]  (!%p1269_p13), %s1265_s16, 512, %s1273_s18, %s1275_s20, %s1155_s26, %s1155_s26, %s1156_s28  }
  0x2c   : > { %p937_p9 = scmp.ge.s32.totalorder %s1152_s24, 1  ;;  %p231_p1 = scmp.lt.s32.totalorder %s1152_s24, 3 }
  0x2e   : > { %p232_p3 = pnand %p937_p9, %p231_p1 }
  0x2f   : > { %s1306_s29 = sand.u32 (!%p232_p3), 1, %s1144_s22  }
  0x30   : > { %235 = sbr.rel (%p232_p3) target bundleno = 789 (0x315), region = 44  ;;  %s938_s7 = sshll.u32 (!%p232_p3), %s1306_s29, 5 }
  0x31   : > { %s238_s12 = scalar_lea.sflag (!%p232_p3), [#allocation4], %s1306_s29  ;;  %s241_s13 = scalar_lea.vmem (!%p232_p3), [#allocation3], %s938_s7 }
  0x37   : > { %1131 = dma.done.wait (%p1245_p6), %s238_s12, 512  }
  0x38   : > { %1133 = vsyncadd (%p1245_p6), %s238_s12, 4294966784  ;;  %v1157_v0 = vmov 0   ;;  %v1043_v1 = vld [vmem:[%s241_s13 + $0x4] ss:$16 sps:$4 sm:$0xff]   ;;  %v1045_v2 = vld [vmem:[%s241_s13] ss:$16 sps:$4 sm:$0xff]  }
  0x39   : > { %683 = vmatprep.subr.bf16.mxu1 %v1157_v0  ;;  %1041 = vset.pattern.permute.xlu0 %v1157_v0  ;;  %s1158_s16 = smov 127   ;;  %v1046_v3 = vld [vmem:[%s241_s13 + $0x8] ss:$16 sps:$4 sm:$0xff]   ;;  %v1048_v4 = vld [vmem:[%s241_s13 + $0xc] ss:$16 sps:$4 sm:$0xff]   ;;  %s1159_s8 = smov 126  }
  0x3a   : > { %1042 = vset.pattern.permute.xlu1 %v1157_v0  ;;  %316 = vrot.lane.b32.xlu0 %v1043_v1, %s1158_s16  ;;  %v1049_v5 = vld [vmem:[%s241_s13 + $0x8] ss:$16 sps:$4 sm:$0xff]   ;;  %s1160_s18 = smov 110   ;;  %s1161_s19 = smov 109   ;;  %v1321_v6 = vld [vmem:[%s1421_s1] sm:$0xff]  ;;  %vm638_vm0 = vcmask 130048  }
  0x3b   : > { %642 = vmatprep.subr.bf16.mxu0 %v1043_v1  ;;  %314 = vrot.lane.b32.xlu1 %v1045_v2, %s1158_s16  ;;  %s1162_s20 = smov 108   ;;  %s1163_s11 = smov 92   ;;  %v975_v7 = vcombine.high %v1321_v6, %v1321_v6  ;;  %v626_v8 = vld [vmem:[%s1422_s2] sm:$0xff]  ;;  %vm322_vm1 = vcmask 1039360   ;;  %vm360_vm2 = vcmask 1031168   ;;  %vm398_vm3 = vcmask 900096  }
  0x3c   : > { %643 = vmatpush1.bf16.msra.mxu0 %v1045_v2  ;;  %684 = vmatpush1.bf16.msra.mxu1 %v1049_v5  ;;  %s1164_s14 = smov 91   ;;  %s1165_s26 = smov 90   ;;  %vm436_vm4 = vcmask 891904   ;;  %vm474_vm5 = vcmask 883712   ;;  %vm512_vm6 = vcmask 752640   ;;  %vm550_vm7 = vcmask 744448  }
  0x3d   : > { %685 = vmatprep.subr.bf16.mxu1 %v1157_v0  ;;  %976 = vmatprep.mubr.msk.bf16.mxu0 %vm638_vm0, %v975_v7  ;;  %vm588_vm8 = vcmask 736256   ;;  %vm758_vm9 = vcmask 1043456   ;;  %p1433_p11 = scmp.ne.s32.totalorder %s1430_s9, 0  ;;  %s1166_s12 = smov [#allocation6]  }
  0x3e   : > { %318 = vrot.lane.b32.xlu0 %v1046_v3, %s1158_s16  ;;  %977 = vmatprep.mubr.msk.bf16.mxu1 %vm638_vm0, %v975_v7  ;;  %s1090_s13 = sshll.u32 %s1166_s12, 4  ;;  %s1091_s13 = int_to_ptr.vmem [resolvable:$false] %s1090_s13 }
  0x3f   : > { %320 = vrot.lane.b32.xlu1 %v1048_v4, %s1158_s16  ;;  %s1092_s16 = scalar_lea.vmem %s1091_s13, 768 }
  0x42   : > { %354 = vrot.lane.b32.xlu0 %v1043_v1, %s1159_s8 }
  0x43   : > { %356 = vrot.lane.b32.xlu1 %v1046_v3, %s1159_s8 }
  0x46   : > { %352 = vrot.lane.b32.xlu0 %v1045_v2, %s1159_s8 }
  0x47   : > { %358 = vrot.lane.b32.xlu1 %v1048_v4, %s1159_s8 }
  0x4a   : > { %392 = vrot.lane.b32.xlu0 %v1043_v1, %s1160_s18 }
  0x4b   : > { %394 = vrot.lane.b32.xlu1 %v1046_v3, %s1160_s18 }
  0x4e   : > { %390 = vrot.lane.b32.xlu0 %v1045_v2, %s1160_s18 }
  0x4f   : > { %396 = vrot.lane.b32.xlu1 %v1048_v4, %s1160_s18 }
  0x52   : > { %430 = vrot.lane.b32.xlu0 %v1043_v1, %s1161_s19 }
  0x53   : > { %432 = vrot.lane.b32.xlu1 %v1046_v3, %s1161_s19 }
  0x56   : > { %428 = vrot.lane.b32.xlu0 %v1045_v2, %s1161_s19 }
  0x57   : > { %434 = vrot.lane.b32.xlu1 %v1048_v4, %s1161_s19 }
  0x5a   : > { %468 = vrot.lane.b32.xlu0 %v1043_v1, %s1162_s20 }
  0x5b   : > { %470 = vrot.lane.b32.xlu1 %v1046_v3, %s1162_s20 }
  0x5e   : > { %466 = vrot.lane.b32.xlu0 %v1045_v2, %s1162_s20 }
  0x5f   : > { %472 = vrot.lane.b32.xlu1 %v1048_v4, %s1162_s20  ;;  %s982_s20 = smul.u32 24, %s1306_s29 }
  0x62   : > { %506 = vrot.lane.b32.xlu0 %v1043_v1, %s1163_s11 }
  0x63   : > { %508 = vrot.lane.b32.xlu1 %v1046_v3, %s1163_s11 }
  0x66   : > { %504 = vrot.lane.b32.xlu0 %v1045_v2, %s1163_s11 }
  0x67   : > { %510 = vrot.lane.b32.xlu1 %v1048_v4, %s1163_s11  ;;  %s983_s11 = smul.u32 384, %s1223_s25  ;;  %s847_s25 = scalar_lea.sflag [#allocation5], %s1306_s29 }
  0x69   : > { %s1376_s28 = scalar_lea.hbm %s1426_s6, %s983_s11 }
  0x6a   : > { %544 = vrot.lane.b32.xlu0 %v1043_v1, %s1164_s14 }
  0x6b   : > { %546 = vrot.lane.b32.xlu1 %v1046_v3, %s1164_s14 }
  0x6e   : > { %542 = vrot.lane.b32.xlu0 %v1045_v2, %s1164_s14 }
  0x6f   : > { %548 = vrot.lane.b32.xlu1 %v1048_v4, %s1164_s14  ;;  %s269_s14 = scalar_lea.vmem [#allocation6], %s982_s20 }
  0x70   : > { %s861_s15 = sshll.u32 %s269_s14, 4  ;;  %s1378_s15 = int_to_ptr.vmem [resolvable:$true] %s861_s15 }
  0x71   : > { %s1086_s7 = scalar_lea.vmem %s1378_s15, 384  ;;  %p1093_p8 = scmp.lt.s32.totalorder %s1378_s15, %s1091_s13 }
  0x72   : > { %582 = vrot.lane.b32.xlu0 %v1043_v1, %s1165_s26  ;;  %v974_v1 = vcombine.low %v1321_v6, %v1321_v6  ;;  %p1087_p6 = scmp.ne.s32.totalorder %s1378_s15, %s1086_s7  ;;  %p1094_p10 = scmp.lt.s32.totalorder %s1092_s16, %s1086_s7 }
  0x73   : > { %584 = vrot.lane.b32.xlu1 %v1046_v3, %s1165_s26  ;;  %v725_v3 = vlaneseq }
  0x74   : > { %p1088_p12 = pnand %p1087_p6, %p1433_p11  ;;  %p1095_p0 = por %p1094_p10, %p1093_p8 }
  0x76   : > { %580 = vrot.lane.b32.xlu0 %v1045_v2, %s1165_s26  ;;  %p1089_p13 = pneg %p1088_p12 }
  0x77   : > { %586 = vrot.lane.b32.xlu1 %v1048_v4, %s1165_s26  ;;  %v1337_v4 = vshrl.u32 %v725_v3, 7 }
  0x78   : > { %p1096_p2 = pnand %p1095_p0, %p1089_p13 }
  0x79   : > { %v727_v5 = vsub.s32 0, %v1337_v4  ;;  %v735_v7 = vsub.s32 2, %v1337_v4  ;;  %vm780_vm10 = vcmp.lt.s32.totalorder %v1337_v4, 4  ;;  %vm810_vm11 = vcmp.ge.s32.totalorder %v1337_v4, 4 }
  0x7a   : > { %629 = vperm.xlu0 %1041, %v626_v8   ;;  %v731_v8 = vsub.s32 1, %v1337_v4 }
  0xac   : > { %v317_v9 = vpop.permute.xlu0 %316 }
  0xad   : > { %v315_v10 = vpop.permute.xlu1 %314 }
  0xae   : > { %v323_v15 = vsel %vm322_vm1, %v315_v10, %v317_v9 }
  0xb0   : > { %v319_v11 = vpop.permute.xlu0 %318 }
  0xb1   : > { %v321_v12 = vpop.permute.xlu1 %320  ;;  %v324_v13 = vsel %vm322_vm1, %v317_v9, %v319_v11 }
  0xb2   : > { %644 = vmatprep.subr.bf16.mxu0 %v324_v13  ;;  %v325_v14 = vsel %vm322_vm1, %v319_v11, %v321_v12 }
  0xb3   : > { %686 = vmatpush1.bf16.msra.mxu1 %v325_v14  ;;  %645 = vmatpush1.bf16.msra.mxu0 %v323_v15 }
  0xb4   : > { %v355_v16 = vpop.permute.xlu0 %354  ;;  %687 = vmatprep.subr.bf16.mxu1 %v1157_v0 }
  0xb5   : > { %v357_v17 = vpop.permute.xlu1 %356 }
  0xb6   : > { %v362_v18 = vsel %vm360_vm2, %v355_v16, %v357_v17 }
  0xb7   : > { %646 = vmatprep.subr.bf16.mxu0 %v362_v18 }
  0xb8   : > { %v353_v19 = vpop.permute.xlu0 %352 }
  0xb9   : > { %v359_v20 = vpop.permute.xlu1 %358  ;;  %v361_v21 = vsel %vm360_vm2, %v353_v19, %v355_v16 }
  0xba   : > { %647 = vmatpush1.bf16.msra.mxu0 %v361_v21  ;;  %v363_v22 = vsel %vm360_vm2, %v357_v17, %v359_v20 }
  0xbb   : > { %688 = vmatpush1.bf16.msra.mxu1 %v363_v22 }
  0xbc   : > { %v393_v23 = vpop.permute.xlu0 %392  ;;  %689 = vmatprep.subr.bf16.mxu1 %v1157_v0 }
  0xbd   : > { %v395_v24 = vpop.permute.xlu1 %394 }
  0xbe   : > { %v400_v25 = vsel %vm398_vm3, %v393_v23, %v395_v24 }
  0xbf   : > { %648 = vmatprep.subr.bf16.mxu0 %v400_v25 }
  0xc0   : > { %v391_v26 = vpop.permute.xlu0 %390 }
  0xc1   : > { %v397_v27 = vpop.permute.xlu1 %396  ;;  %v399_v28 = vsel %vm398_vm3, %v391_v26, %v393_v23 }
  0xc2   : > { %649 = vmatpush1.bf16.msra.mxu0 %v399_v28  ;;  %v401_v29 = vsel %vm398_vm3, %v395_v24, %v397_v27 }
  0xc3   : > { %690 = vmatpush1.bf16.msra.mxu1 %v401_v29 }
  0xc4   : > { %v431_v30 = vpop.permute.xlu0 %430  ;;  %691 = vmatprep.subr.bf16.mxu1 %v1157_v0 }
  0xc5   : > { %v433_v31 = vpop.permute.xlu1 %432 }
  0xc6   : > { %v438_v32 = vsel %vm436_vm4, %v431_v30, %v433_v31 }
  0xc7   : > { %650 = vmatprep.subr.bf16.mxu0 %v438_v32 }
  0xc8   : > { %v429_v33 = vpop.permute.xlu0 %428 }
  0xc9   : > { %v435_v34 = vpop.permute.xlu1 %434  ;;  %v437_v35 = vsel %vm436_vm4, %v429_v33, %v431_v30 }
  0xca   : > { %651 = vmatpush1.bf16.msra.mxu0 %v437_v35  ;;  %v439_v36 = vsel %vm436_vm4, %v433_v31, %v435_v34 }
  0xcb   : > { %692 = vmatpush1.bf16.msra.mxu1 %v439_v36 }
  0xcc   : > { %v469_v37 = vpop.permute.xlu0 %468  ;;  %693 = vmatprep.subr.bf16.mxu1 %v1157_v0 }
  0xcd   : > { %v471_v38 = vpop.permute.xlu1 %470 }
  0xce   : > { %v476_v39 = vsel %vm474_vm5, %v469_v37, %v471_v38 }
  0xcf   : > { %652 = vmatprep.subr.bf16.mxu0 %v476_v39 }
  0xd0   : > { %v467_v40 = vpop.permute.xlu0 %466 }
  0xd1   : > { %v473_v41 = vpop.permute.xlu1 %472  ;;  %v475_v42 = vsel %vm474_vm5, %v467_v40, %v469_v37 }
  0xd2   : > { %653 = vmatpush1.bf16.msra.mxu0 %v475_v42  ;;  %v477_v43 = vsel %vm474_vm5, %v471_v38, %v473_v41 }
  0xd3   : > { %694 = vmatpush1.bf16.msra.mxu1 %v477_v43 }
  0xd4   : > { %v507_v44 = vpop.permute.xlu0 %506  ;;  %695 = vmatprep.subr.bf16.mxu1 %v1157_v0 }
  0xd5   : > { %v509_v45 = vpop.permute.xlu1 %508 }
  0xd6   : > { %v514_v46 = vsel %vm512_vm6, %v507_v44, %v509_v45 }
  0xd7   : > { %654 = vmatprep.subr.bf16.mxu0 %v514_v46 }
  0xd8   : > { %v505_v47 = vpop.permute.xlu0 %504 }
  0xd9   : > { %v511_v48 = vpop.permute.xlu1 %510  ;;  %v513_v49 = vsel %vm512_vm6, %v505_v47, %v507_v44 }
  0xda   : > { %655 = vmatpush1.bf16.msra.mxu0 %v513_v49  ;;  %v515_v50 = vsel %vm512_vm6, %v509_v45, %v511_v48 }
  0xdb   : > { %696 = vmatpush1.bf16.msra.mxu1 %v515_v50 }
  0xdc   : > { %v545_v51 = vpop.permute.xlu0 %544  ;;  %697 = vmatprep.subr.bf16.mxu1 %v1157_v0 }
  0xdd   : > { %v547_v52 = vpop.permute.xlu1 %546 }
  0xde   : > { %v552_v53 = vsel %vm550_vm7, %v545_v51, %v547_v52 }
  0xdf   : > { %656 = vmatprep.subr.bf16.mxu0 %v552_v53 }
  0xe0   : > { %v543_v54 = vpop.permute.xlu0 %542 }
  0xe1   : > { %v549_v55 = vpop.permute.xlu1 %548  ;;  %v551_v56 = vsel %vm550_vm7, %v543_v54, %v545_v51 }
  0xe2   : > { %657 = vmatpush1.bf16.msra.mxu0 %v551_v56  ;;  %v553_v57 = vsel %vm550_vm7, %v547_v52, %v549_v55 }
  0xe3   : > { %698 = vmatpush1.bf16.msra.mxu1 %v553_v57 }
  0xe4   : > { %v583_v58 = vpop.permute.xlu0 %582  ;;  %699 = vmatprep.subr.bf16.mxu1 %v1157_v0  ;;  %v723_v0 = vld [vmem:[%s1425_s5] sm:$0x7] }
  0xe5   : > { %v585_v59 = vpop.permute.xlu1 %584  ;;  %v728_v6 = vrot.slane %v723_v0, %v727_v5  ;;  %v736_v11 = vrot.slane %v723_v0, %v735_v7  ;;  %v732_v12 = vrot.slane %v723_v0, %v731_v8 }
  0xe6   : > { %v590_v60 = vsel %vm588_vm8, %v583_v58, %v585_v59 }
  0xe7   : > { %658 = vmatprep.subr.bf16.mxu0 %v590_v60 }
  0xe8   : > { %v581_v61 = vpop.permute.xlu0 %580 }
  0xe9   : > { %v587_v62 = vpop.permute.xlu1 %586  ;;  %v589_v63 = vsel %vm588_vm8, %v581_v61, %v583_v58 }
  0xea   : > { %659 = vmatpush1.bf16.msra.mxu0 %v589_v63  ;;  %v591_v2 = vsel %vm588_vm8, %v585_v59, %v587_v62 }
  0xeb   : > { %700 = vmatpush1.bf16.msra.mxu1 %v591_v2 }
  0xed   : > { %675 = vmatmul.mubr.bf16.vlgmr.msra.gmra.mrb[0].mxu0 %v974_v1 }
  0xee   : > { %716 = vmatmul.mubr.bf16.vlgmr.msra.gmra.mrb[0].mxu1 %v974_v1 }
  0xf9   : > { %v630_v9 = vpop.permute.xlu0 %629 }
 0x1c0   : > { %v676_v10 = vpop.f32.mrb[0].mxu0 }
 0x1c1   : > { %v677_v13 = vadd.f32 %v676_v10, %v630_v9  ;;  %v717_v14 = vpop.f32.mrb[0].mxu1  ;;  %v678_v15 = vpop.f32.mrb[1].mxu0 }
 0x1c2   : > { %v718_v16 = vadd.f32 %v717_v14, %v630_v9  ;;  %v679_v17 = vadd.f32 %v678_v15, %v630_v9  ;;  %v719_v18 = vpop.f32.mrb[1].mxu1  ;;  %v680_v19 = vpop.f32.mrb[2].mxu0 }
 0x1c3   : > { %v1345_v20 = vmul.f32 %v728_v6, %v677_v13  ;;  %v720_v21 = vpop.f32.mrb[2].mxu1  ;;  %v681_v22 = vpop.f32.mrb[3].mxu0  ;;  %v743_v13 = vld [vmem:[%s1423_s3] sm:$0xff] }
 0x1c4   : > { %v1347_v23 = vmul.f32 %v736_v11, %v718_v16  ;;  %v1349_v24 = vmul.f32 %v732_v12, %v679_v17  ;;  %v721_v25 = vpop.f32.mrb[3].mxu1  ;;  %v744_v19 = vld [vmem:[%s1424_s4] sm:$0xff] }
 0x1c5   : > { %v751_v26 = vmul.f32 %v1345_v20, %v1345_v20 }
 0x1c6   : > { %v747_v27 = vadd.f32 %v1349_v24, %v1345_v20  ;;  %v752_v28 = vmul.f32 %v1349_v24, %v1349_v24  ;;  %v753_v30 = vmul.f32 %v1347_v23, %v1347_v23 }
 0x1c8   : > { %v748_v29 = vadd.f32 %v747_v27, %v1347_v23  ;;  %v754_v31 = vadd.f32 %v752_v28, %v751_v26 }
 0x1ca   : > { %749 = vadd.xlane.f32.xlu1 %v748_v29  ;;  %v755_v32 = vadd.f32 %v754_v31, %v753_v30 }
 0x1cc   : > { %756 = vadd.xlane.f32.xlu0 %v755_v32 }
 0x257   : > { %v750_v33 = vpop.xlane.xlu1 %749 }
 0x258   : > { %v759_v34 = vsel %vm758_vm9, %v750_v33, 0.0  ;;  %v785_v35 = vrot.slane %v750_v33, 4 }
 0x259   : > { %v760_v36 = vrot.slane %v759_v34, 4  ;;  %v757_v37 = vpop.xlane.xlu0 %756 }
 0x25a   : > { %v787_v38 = vsel %vm758_vm9, %v785_v35, 0.0  ;;  %v766_v39 = vsel %vm758_vm9, %v757_v37, 0.0  ;;  %v795_v40 = vrot.slane %v757_v37, 4 }
 0x25b   : > { %v761_v41 = vadd.f32 %v760_v36, %v759_v34  ;;  %v788_v42 = vrot.slane %v787_v38, 4  ;;  %v767_v43 = vrot.slane %v766_v39, 4 }
 0x25c   : > { %v797_v44 = vsel %vm758_vm9, %v795_v40, 0.0 }
 0x25d   : > { %v762_v45 = vrot.slane %v761_v41, 2  ;;  %v789_v46 = vadd.f32 %v788_v42, %v787_v38  ;;  %v768_v47 = vadd.f32 %v767_v43, %v766_v39  ;;  %v798_v48 = vrot.slane %v797_v44, 4 }
 0x25f   : > { %v763_v49 = vadd.f32 %v762_v45, %v761_v41  ;;  %v790_v50 = vrot.slane %v789_v46, 2  ;;  %v769_v51 = vrot.slane %v768_v47, 2  ;;  %v799_v52 = vadd.f32 %v798_v48, %v797_v44 }
 0x261   : > { %v764_v53 = vrot.slane %v763_v49, 1  ;;  %v791_v54 = vadd.f32 %v790_v50, %v789_v46  ;;  %v770_v55 = vadd.f32 %v769_v51, %v768_v47  ;;  %v800_v56 = vrot.slane %v799_v52, 2 }
 0x263   : > { %v765_v57 = vadd.f32 %v764_v53, %v763_v49  ;;  %v792_v58 = vrot.slane %v791_v54, 1  ;;  %v771_v59 = vrot.slane %v770_v55, 1  ;;  %v801_v60 = vadd.f32 %v800_v56, %v799_v52 }
 0x265   : > { %v773_v61 = vmul.f32 0.0009765625, %v765_v57  ;;  %v793_v62 = vadd.f32 %v792_v58, %v791_v54  ;;  %v772_v63 = vadd.f32 %v771_v59, %v770_v55  ;;  %v802_v1 = vrot.slane %v801_v60, 1 }
 0x267   : > { %v775_v2 = vmul.f32 %v773_v61, %v773_v61  ;;  %v804_v3 = vmul.f32 0.0009765625, %v793_v62  ;;  %v774_v5 = vmul.f32 0.0009765625, %v772_v63  ;;  %v803_v0 = vadd.f32 %v802_v1, %v801_v60 }
 0x268   : > { %v782_v16 = vsel %vm780_vm10, %v773_v61, 0.0 }
 0x269   : > { %v806_v7 = vmul.f32 %v804_v3, %v804_v3  ;;  %v776_v8 = vsub.f32 %v774_v5, %v775_v2  ;;  %v805_v9 = vmul.f32 0.0009765625, %v803_v0  ;;  %v813_v21 = vsel %vm810_vm11, %v804_v3, %v782_v16 }
 0x26b   : > { %v777_v6 = vadd.f32 1e-05, %v776_v8  ;;  %v807_v10 = vsub.f32 %v805_v9, %v806_v7 }
 0x26d   : > { %1052 = vrsqrt.f32 %v777_v6  ;;  %v808_v11 = vadd.f32 1e-05, %v807_v10 }
 0x26f   : > { %1054 = vrsqrt.f32 %v808_v11 }
 0x277   : > { %v1053_v12 = vpop.eup %1052 }
 0x278   : > { %v783_v14 = vsel %vm780_vm10, %v1053_v12, 0.0 }
 0x279   : > { %v1055_v15 = vpop.eup %1054 }
 0x27a   : > { %v814_v17 = vsel %vm810_vm11, %v1055_v15, %v783_v14 }
 0x27b   : > { %v815_v18 = vmul.f32 %v814_v17, %v743_v13 }
 0x27d   : > { %820 = vperm.xlu1 %1042, %v815_v18   ;;  %v816_v22 = vmul.f32 %v815_v18, %v813_v21 }
 0x27f   : > { %v817_v25 = vsub.f32 %v744_v19, %v816_v22 }
 0x281   : > { %828 = vperm.xlu0 %1041, %v817_v25  }
 0x2fc   : > { %v821_v26 = vpop.permute.xlu1 %820 }
 0x2fd   : > { %v823_v27 = vmul.f32 %v821_v26, %v1345_v20  ;;  %v824_v28 = vmul.f32 %v821_v26, %v1349_v24  ;;  %v825_v4 = vmul.f32 %v821_v26, %v1347_v23 }
 0x300   : > { %v829_v29 = vpop.permute.xlu0 %828 }
 0x301   : > { %v831_v30 = vadd.f32 %v829_v29, %v823_v27  ;;  %v832_v31 = vadd.f32 %v829_v29, %v824_v28  ;;  %v833_v32 = vadd.f32 %v829_v29, %v825_v4 }
 0x303   : > { %vm834_vm12 = vcmp.gt.f32.partialorder %v831_v30, 0.0  ;;  %vm835_vm13 = vcmp.gt.f32.partialorder %v832_v31, 0.0  ;;  %vm836_vm14 = vcmp.gt.f32.partialorder %v833_v32, 0.0  ;;  %v837_v33 = vmul.f32 0.2, %v831_v30 }
 0x304   : > { %v838_v34 = vmul.f32 0.2, %v832_v31  ;;  %v839_v35 = vmul.f32 0.2, %v833_v32 }
 0x305   : > { %v840_v20 = vsel %vm834_vm12, %v831_v30, %v837_v33 }
 0x306   : > { %v841_v23 = vsel %vm835_vm13, %v832_v31, %v838_v34  ;;  %v842_v24 = vsel %vm836_vm14, %v833_v32, %v839_v35  ;;  %843 = vst [vmem:[%s269_s14] sm:$0xff] %v840_v20 }
 0x307   : > { %844 = vst [vmem:[%s269_s14 + $0x8] sm:$0xff] %v841_v23  ;;  %845 = vst [vmem:[%s269_s14 + $0x10] sm:$0xff] %v842_v24 }
 0x308   : > { %1099 = shalt.err (!%p1096_p2)
}
 0x309   : > { %s1100_s29 = scalar_lea.hbm %s1376_s28, 384  ;;  %s1104_s19 = scalar_lea.hbm %s1426_s6, 768 }
 0x30a   : > { %p1101_p4 = scmp.ne.s32.totalorder %s1376_s28, %s1100_s29  ;;  %p1105_p9 = scmp.lt.u32.totalorder %s1376_s28, %s1426_s6 }
 0x30b   : > { %p1106_p1 = scmp.lt.u32.totalorder %s1104_s19, %s1100_s29  ;;  %p1108_p6 = scmp.lt.u32.totalorder %s1100_s29, %s1376_s28 }
 0x30c   : > { %p1102_p5 = pnand %p1101_p4, %p1433_p11 }
 0x30d   : > { %p1107_p3 = por %p1106_p1, %p1105_p9 }
 0x30e   : > { %p1103_p7 = pneg %p1102_p5 }
 0x30f   : > { %p1109_p12 = por %p1108_p6, %p1107_p3 }
 0x311   : > { %p1110_p13 = pnand %p1109_p12, %p1103_p7 }
 0x313   : > { %1113 = shalt.err (!%p1110_p13)
}
 0x314   : > { %986 = dma.vmem_to_hbm [thread:$0]  (%p1433_p11), %s1378_s15, 384, %s1376_s28, %s847_s25  }
 0x315 PF: > { %s873_s14 = sand.u32 1, %s1140_s21   ;;  %p1434_p8 = scmp.ne.s32.totalorder %s1431_s10, 0 }
 0x316   : > { %p1435_p10 = scmp.ge.s32.totalorder %s1152_s24, 2  ;;  %s874_s17 = scalar_lea.sflag [#allocation5], %s873_s14 }
 0x318   : > { %p993_p0 = pnand %p1435_p10, %p1434_p8 }
 0x31a   : > { %1135 = dma.done.wait (!%p993_p0), %s874_s17, 384  }
 0x31b   : > { %1137 = vsyncadd (!%p993_p0), %s874_s17, 4294966912  ;;  %p19_p2 = scmp.ge.s32.totalorder %s1227_s27, 4   ;;  %s1436_s21 = smov %s1144_s22 }
 0x31c   : > { %s1437_s22 = smov %s1148_s23  ;;  %s1438_s23 = smov %s1239_s30 }
 0x31d   : > { %s1439_s24 = smov %s1227_s27  ;;  %21 = sbr.rel (!%p19_p2) target bundleno = 5 (0x5), region = 89 }
 0x324   :  { %879 = vsyncpa [#allocation4], 1 }
 0x325   :  { %881 = vsyncpa [#allocation4 + $0x1], 1 }
 0x326   :  { %882 = vsyncpa [#allocation5], 1 }
 0x327   :  { %884 = vsyncpa [#allocation5 + $0x1], 1 }

</bundles_post_ra>
